<compile_context>
chip_gen: v6e
topology: v6e:2x2x1
jax: 0.10.0
libtpu: 0.0.40
codegen_flags: <defaults>
</compile_context>

<pallas_src>
import functools

import jax
import jax.numpy as jnp
from jax.experimental import pallas as pl
from jax.experimental.pallas import tpu as pltpu


def _bce_masked_sums_kernel(flag_ref, l1_ref, l2_ref, lab_ref, out_ref,
                            *, batch_size, block_b, tiles_per_split):
    p = pl.program_id(0)   # parallel batch split (keeps both v7x TCs busy)
    i = pl.program_id(1)   # sequential batch tiles within this split

    @pl.when(i == 0)
    def _init():
        out_ref[...] = jnp.zeros_like(out_ref)

    flag = flag_ref[...]                                   # (1, TB) int32
    x1 = l1_ref[...].astype(jnp.float32)                   # (nd, TB)
    x2 = l2_ref[...].astype(jnp.float32)                   # (nd, TB)
    lab = lab_ref[...].astype(jnp.float32)                 # (2, TB)
    y1 = lab[0:1, :]                                       # pairs with logit1
    y2 = lab[1:2, :]                                       # pairs with logit2

    nd, tb = x1.shape
    c_idx = jax.lax.broadcasted_iota(jnp.int32, (nd, tb), 0)   # dataset column
    b_idx = jax.lax.broadcasted_iota(jnp.int32, (nd, tb), 1)   # lane = batch pos
    b_idx = b_idx + (p * tiles_per_split + i) * block_b
    # mask[c, b] = (flag[b] == c) and b in-bounds (guards a partial last tile)
    mask = jnp.logical_and(flag == c_idx, b_idx < batch_size)

    def bce(x, y):
        # numerically stable BCE-with-logits (matches torch.nn.BCEWithLogitsLoss)
        return jnp.maximum(x, 0.0) - x * y + jnp.log1p(jnp.exp(-jnp.abs(x)))

    def masked_sum(v):
        return jnp.sum(jnp.where(mask, v, 0.0), axis=1, keepdims=True)  # (nd, 1)

    s1 = masked_sum(bce(x1, y1))                           # (nd, 1)
    s2 = masked_sum(bce(x2, y2))                           # (nd, 1)
    cnt = jnp.sum(jnp.where(mask, 1.0, 0.0), axis=1, keepdims=True)     # (nd, 1)
    out_ref[...] += jnp.concatenate([s1, s2, cnt], axis=1)[None]        # (1, nd, 3)


def _bce_masked_sums(logit1, logit2, labels, flag_i32, *, tb_max=16384):
    """Masked per-dataset-column BCE sums and counts.

    Returns (nd, 3) float32 where, for dataset column c:
      [c, 0] = sum_b [flag[b] == c] * bce(logit1[b, c], labels[b, 0])
      [c, 1] = sum_b [flag[b] == c] * bce(logit2[b, c], labels[b, 1])
      [c, 2] = sum_b [flag[b] == c]
    """
    B, nd = logit1.shape
    # Lane-major layout: batch on the lane axis -> dense vregs in the kernel.
    l1t = jnp.transpose(logit1)                # (nd, B)
    l2t = jnp.transpose(logit2)                # (nd, B)
    labt = jnp.transpose(labels)               # (2, B)
    flag2d = flag_i32.reshape(1, B)            # free reshape (no transpose)

    tb = B if B <= tb_max else tb_max          # full extent, or 128-aligned tile
    tiles_total = (B + tb - 1) // tb
    # use both TensorCores (v7x) when the tile count splits evenly
    nsplit = 2 if (tiles_total >= 2 and tiles_total % 2 == 0) else 1
    tiles_per_split = tiles_total // nsplit

    def in_map(p, i):
        return (0, p * tiles_per_split + i)

    kernel = functools.partial(
        _bce_masked_sums_kernel,
        batch_size=B, block_b=tb, tiles_per_split=tiles_per_split)

    partial_sums = pl.pallas_call(
        kernel,
        out_shape=jax.ShapeDtypeStruct((nsplit, nd, 3), jnp.float32),
        grid=(nsplit, tiles_per_split),
        in_specs=[
            pl.BlockSpec((1, tb), in_map),     # flag   (int32, lane-major)
            pl.BlockSpec((nd, tb), in_map),    # logit1^T
            pl.BlockSpec((nd, tb), in_map),    # logit2^T
            pl.BlockSpec((2, tb), in_map),     # labels^T
        ],
        out_specs=pl.BlockSpec((1, nd, 3), lambda p, i: (p, 0, 0)),
        compiler_params=pltpu.CompilerParams(
            dimension_semantics=("parallel", "arbitrary")),
    )(flag2d, l1t, l2t, labt)
    return jnp.sum(partial_sums, axis=0)       # (nd, 3)


@functools.partial(jax.jit, static_argnames=("tb_max",))
def bce_logit_loss(logit1, logit2, labels, flag, lambda_dict, *, tb_max=16384):
    """JAX/Pallas port of BCELogitLoss.forward.

    logit1, logit2: (batch, n_datasets) logits
    labels:         (batch, 2) {0,1}
    flag:           (batch,) int; 0 -> HiEve, 1 -> MATRES
    lambda_dict:    {'lambda_condi_h': float, 'lambda_condi_m': float}
    """
    B, nd = logit1.shape
    if nd == 1:
        # loss = mean BCE(logit1, labels[:, :1]) + mean BCE(logit2, labels[:, 1:2])
        zero_flag = jnp.zeros((B,), jnp.int32)          # select column 0 everywhere
        t = _bce_masked_sums(logit1, logit2, labels, zero_flag, tb_max=tb_max)
        return (t[0, 0] + t[0, 1]) / t[0, 2]            # cnt == B

    flag_i32 = flag.astype(jnp.int32)
    t = _bce_masked_sums(logit1, logit2, labels, flag_i32, tb_max=tb_max)
    # 0/0 -> NaN matches torch's mean over an empty selection
    hieve_loss = (t[0, 0] + t[0, 1]) / t[0, 2]
    matres_loss = (t[1, 0] + t[1, 1]) / t[1, 2]
    return (lambda_dict["lambda_condi_h"] * hieve_loss
            + lambda_dict["lambda_condi_m"] * matres_loss)


def _reference_loss(logit1, logit2, labels, flag, lambda_dict):
    """Pure-JAX reference mirroring the PyTorch module."""
    labels = labels.astype(jnp.float32)

    def per_elem(x, y):
        return jnp.maximum(x, 0.0) - x * y + jnp.log1p(jnp.exp(-jnp.abs(x)))

    if logit1.shape[-1] == 1:
        return (jnp.mean(per_elem(logit1[:, 0], labels[:, 0]))
                + jnp.mean(per_elem(logit2[:, 0], labels[:, 1])))

    def masked_mean(x, y, m):
        return jnp.sum(jnp.where(m, per_elem(x, y), 0.0)) / jnp.sum(m.astype(jnp.float32))

    h, m = flag == 0, flag == 1
    hieve = (masked_mean(logit1[:, 0], labels[:, 0], h)
             + masked_mean(logit2[:, 0], labels[:, 1], h))
    matres = (masked_mean(logit1[:, 1], labels[:, 0], m)
              + masked_mean(logit2[:, 1], labels[:, 1], m))
    return (lambda_dict["lambda_condi_h"] * hieve
            + lambda_dict["lambda_condi_m"] * matres)


if __name__ == "__main__":
    # BCEWithLogitsLoss has no learnable parameters; nothing to initialize.
    key = jax.random.PRNGKey(0)
    k1, k2, k3, k4, k5, k6 = jax.random.split(key, 6)

    lambda_dict = {"lambda_condi_h": 0.5, "lambda_condi_m": 1.0}

    # --- multi-dataset path (n_datasets = 2), small batch --------------------
    B, nd = 8, 2
    logit1 = jax.random.normal(k1, (B, nd), dtype=jnp.float32)
    logit2 = jax.random.normal(k2, (B, nd), dtype=jnp.float32)
    labels = jax.random.bernoulli(k3, 0.5, (B, 2)).astype(jnp.int32)
    flag = jnp.array([0, 1, 0, 1, 0, 1, 0, 1], dtype=jnp.int32)  # both datasets present

    loss_multi = bce_logit_loss(logit1, logit2, labels, flag, lambda_dict)
    jax.block_until_ready(loss_multi)
    ref_multi = _reference_loss(logit1, logit2, labels, flag, lambda_dict)
    assert jnp.allclose(loss_multi, ref_multi, rtol=1e-5, atol=1e-5)

    # --- single-dataset path (n_datasets = 1) --------------------------------
    logit1_s = jax.random.normal(k4, (B, 1), dtype=jnp.float32)
    logit2_s = -logit1_s
    loss_single = bce_logit_loss(logit1_s, logit2_s, labels, flag, lambda_dict)
    jax.block_until_ready(loss_single)
    ref_single = _reference_loss(logit1_s, logit2_s, labels, flag, lambda_dict)
    assert jnp.allclose(loss_single, ref_single, rtol=1e-5, atol=1e-5)

    # --- larger batch with a small tile: exercises batch grid, dual-core
    #     split and the partial-last-tile validity mask -------------------------
    Bg = 1000
    logit1_g = jax.random.normal(k5, (Bg, nd), dtype=jnp.float32)
    logit2_g = jax.random.normal(k6, (Bg, nd), dtype=jnp.float32)
    labels_g = (jax.random.uniform(k3, (Bg, 2)) > 0.5).astype(jnp.int32)
    flag_g = (jnp.arange(Bg) % 2).astype(jnp.int32)
    loss_g = bce_logit_loss(logit1_g, logit2_g, labels_g, flag_g, lambda_dict,
                            tb_max=128)   # 8 tiles -> grid (2, 4), partial last tile
    jax.block_until_ready(loss_g)
    ref_g = _reference_loss(logit1_g, logit2_g, labels_g, flag_g, lambda_dict)
    assert jnp.allclose(loss_g, ref_g, rtol=1e-4, atol=1e-5)

    print("KERNEL_OK")
</pallas_src>

<mosaic_0001>
module attributes {stable_mosaic.version = 11 : i64} {
  func.func @_bce_masked_sums_kernel(%arg0: i32, %arg1: i32, %arg2: memref<1x8xi32, #tpu.memory_space<vmem>>, %arg3: memref<2x8xf32, #tpu.memory_space<vmem>>, %arg4: memref<2x8xf32, #tpu.memory_space<vmem>>, %arg5: memref<2x8xi32, #tpu.memory_space<vmem>>, %arg6: memref<1x2x3xf32, #tpu.memory_space<vmem>>) attributes {dimension_semantics = [#tpu.dimension_semantics<parallel>, #tpu.dimension_semantics<arbitrary>], iteration_bounds = array<i64: 1, 1>, scalar_prefetch = 0 : i64, scratch_operands = 0 : i64, tpu.core_type = #tpu.core_type<tc>, window_params = [{transform_indices = @transform_0, window_bounds = array<i64: 1, 8>}, {transform_indices = @transform_1, window_bounds = array<i64: 2, 8>}, {transform_indices = @transform_2, window_bounds = array<i64: 2, 8>}, {transform_indices = @transform_3, window_bounds = array<i64: 2, 8>}, {transform_indices = @transform_4, window_bounds = array<i64: 1, 2, 3>}]} {
    %c0_i32 = arith.constant 0 : i32
    %0 = arith.cmpi eq, %arg1, %c0_i32 : i32
    %1 = arith.extui %0 : i1 to i32
    %c0_i32_0 = arith.constant 0 : i32
    %2 = arith.cmpi ne, %1, %c0_i32_0 : i32
    scf.if %2 {
      %cst_25 = arith.constant 0.000000e+00 : f32
      %62 = vector.broadcast %cst_25 : f32 to vector<1x2x3xf32>
      %c0_26 = arith.constant 0 : index
      %c0_27 = arith.constant 0 : index
      %c0_28 = arith.constant 0 : index
      %63 = vector.load %arg6[%c0_26, %c0_27, %c0_28] : memref<1x2x3xf32, #tpu.memory_space<vmem>>, vector<1x2x3xf32>
      tpu.vector_store %arg6[%c0_26, %c0_27, %c0_28], %62 {strides = array<i32>} : memref<1x2x3xf32, #tpu.memory_space<vmem>>, vector<1x2x3xf32>,
    } else {
    }
    %c0 = arith.constant 0 : index
    %c0_1 = arith.constant 0 : index
    %3 = vector.load %arg2[%c0, %c0_1] : memref<1x8xi32, #tpu.memory_space<vmem>>, vector<1x8xi32>
    %c0_2 = arith.constant 0 : index
    %c0_3 = arith.constant 0 : index
    %4 = vector.load %arg3[%c0_2, %c0_3] : memref<2x8xf32, #tpu.memory_space<vmem>>, vector<2x8xf32>
    %c0_4 = arith.constant 0 : index
    %c0_5 = arith.constant 0 : index
    %5 = vector.load %arg4[%c0_4, %c0_5] : memref<2x8xf32, #tpu.memory_space<vmem>>, vector<2x8xf32>
    %c0_6 = arith.constant 0 : index
    %c0_7 = arith.constant 0 : index
    %6 = vector.load %arg5[%c0_6, %c0_7] : memref<2x8xi32, #tpu.memory_space<vmem>>, vector<2x8xi32>
    %7 = arith.sitofp %6 : vector<2x8xi32> to vector<2x8xf32>
    %8 = vector.extract_strided_slice %7 {offsets = [0, 0], sizes = [1, 8], strides = [1, 1]} : vector<2x8xf32> to vector<1x8xf32>
    %9 = vector.extract_strided_slice %7 {offsets = [1, 0], sizes = [1, 8], strides = [1, 1]} : vector<2x8xf32> to vector<1x8xf32>
    %10 = tpu.iota {dimensions = array<i32: 0>} : vector<2x8xi32>
    %11 = tpu.iota {dimensions = array<i32: 1>} : vector<2x8xi32>
    %c1_i32 = arith.constant 1 : i32
    %12 = arith.muli %arg0, %c1_i32 : i32
    %13 = arith.addi %12, %arg1 : i32
    %c8_i32 = arith.constant 8 : i32
    %14 = arith.muli %13, %c8_i32 : i32
    %15 = vector.broadcast %14 : i32 to vector<2x8xi32>
    %16 = arith.addi %11, %15 : vector<2x8xi32>
    %17 = vector.broadcast %3 : vector<1x8xi32> to vector<2x8xi32>
    %18 = arith.cmpi eq, %17, %10 : vector<2x8xi32>
    %c8_i32_8 = arith.constant 8 : i32
    %19 = vector.broadcast %c8_i32_8 : i32 to vector<2x8xi32>
    %20 = arith.cmpi slt, %16, %19 : vector<2x8xi32>
    %21 = arith.andi %18, %20 : vector<2x8xi1>
    %cst = arith.constant 0.000000e+00 : f32
    %22 = vector.broadcast %cst : f32 to vector<2x8xf32>
    %23 = arith.maximumf %4, %22 : vector<2x8xf32>
    %24 = vector.broadcast %8 : vector<1x8xf32> to vector<2x8xf32>
    %25 = arith.mulf %4, %24 : vector<2x8xf32>
    %26 = arith.subf %23, %25 : vector<2x8xf32>
    %27 = math.absf %4 : vector<2x8xf32>
    %cst_9 = arith.constant 0.000000e+00 : f32
    %28 = vector.broadcast %cst_9 : f32 to vector<2x8xf32>
    %29 = arith.subf %28, %27 : vector<2x8xf32>
    %30 = math.exp %29 : vector<2x8xf32>
    %31 = math.log1p %30 : vector<2x8xf32>
    %32 = arith.addf %26, %31 : vector<2x8xf32>
    %cst_10 = arith.constant 0.000000e+00 : f32
    %33 = vector.broadcast %cst_10 : f32 to vector<2x8xf32>
    %34 = arith.select %21, %32, %33 : vector<2x8xi1>, vector<2x8xf32>
    %cst_11 = arith.constant dense<0.000000e+00> : vector<2xf32>
    %35 = vector.multi_reduction <add>, %34, %cst_11 [1] : vector<2x8xf32> to vector<2xf32>
    %36 = vector.shape_cast %35 : vector<2xf32> to vector<2x1xf32>
    %cst_12 = arith.constant 0.000000e+00 : f32
    %37 = vector.broadcast %cst_12 : f32 to vector<2x8xf32>
    %38 = arith.maximumf %5, %37 : vector<2x8xf32>
    %39 = vector.broadcast %9 : vector<1x8xf32> to vector<2x8xf32>
    %40 = arith.mulf %5, %39 : vector<2x8xf32>
    %41 = arith.subf %38, %40 : vector<2x8xf32>
    %42 = math.absf %5 : vector<2x8xf32>
    %cst_13 = arith.constant 0.000000e+00 : f32
    %43 = vector.broadcast %cst_13 : f32 to vector<2x8xf32>
    %44 = arith.subf %43, %42 : vector<2x8xf32>
    %45 = math.exp %44 : vector<2x8xf32>
    %46 = math.log1p %45 : vector<2x8xf32>
    %47 = arith.addf %41, %46 : vector<2x8xf32>
    %cst_14 = arith.constant 0.000000e+00 : f32
    %48 = vector.broadcast %cst_14 : f32 to vector<2x8xf32>
    %49 = arith.select %21, %47, %48 : vector<2x8xi1>, vector<2x8xf32>
    %cst_15 = arith.constant dense<0.000000e+00> : vector<2xf32>
    %50 = vector.multi_reduction <add>, %49, %cst_15 [1] : vector<2x8xf32> to vector<2xf32>
    %51 = vector.shape_cast %50 : vector<2xf32> to vector<2x1xf32>
    %cst_16 = arith.constant 1.000000e+00 : f32
    %cst_17 = arith.constant 0.000000e+00 : f32
    %52 = vector.broadcast %cst_16 : f32 to vector<2x8xf32>
    %53 = vector.broadcast %cst_17 : f32 to vector<2x8xf32>
    %54 = arith.select %21, %52, %53 : vector<2x8xi1>, vector<2x8xf32>
    %cst_18 = arith.constant dense<0.000000e+00> : vector<2xf32>
    %55 = vector.multi_reduction <add>, %54, %cst_18 [1] : vector<2x8xf32> to vector<2xf32>
    %56 = vector.shape_cast %55 : vector<2xf32> to vector<2x1xf32>
    %c0_19 = arith.constant 0 : index
    %c0_20 = arith.constant 0 : index
    %c0_21 = arith.constant 0 : index
    %57 = vector.load %arg6[%c0_19, %c0_20, %c0_21] : memref<1x2x3xf32, #tpu.memory_space<vmem>>, vector<1x2x3xf32>
    %58 = tpu.concatenate %36, %51, %56 in 1 : vector<2x1xf32>, vector<2x1xf32>, vector<2x1xf32> -> vector<2x3xf32>
    %59 = vector.shape_cast %58 : vector<2x3xf32> to vector<1x2x3xf32>
    %60 = arith.addf %57, %59 : vector<1x2x3xf32>
    %c0_22 = arith.constant 0 : index
    %c0_23 = arith.constant 0 : index
    %c0_24 = arith.constant 0 : index
    %61 = vector.load %arg6[%c0_22, %c0_23, %c0_24] : memref<1x2x3xf32, #tpu.memory_space<vmem>>, vector<1x2x3xf32>
    tpu.vector_store %arg6[%c0_22, %c0_23, %c0_24], %60 {strides = array<i32>} : memref<1x2x3xf32, #tpu.memory_space<vmem>>, vector<1x2x3xf32>,
    return
  }
  func.func @transform_0(%arg0: i32, %arg1: i32) -> (i32, i32) {
    %c1_i32 = arith.constant 1 : i32
    %0 = arith.muli %arg0, %c1_i32 : i32
    %1 = arith.addi %0, %arg1 : i32
    %c0_i32 = arith.constant 0 : i32
    %c0_i32_0 = arith.constant 0 : i32
    return %c0_i32, %1 : i32, i32
  }
  func.func @transform_1(%arg0: i32, %arg1: i32) -> (i32, i32) {
    %c1_i32 = arith.constant 1 : i32
    %0 = arith.muli %arg0, %c1_i32 : i32
    %1 = arith.addi %0, %arg1 : i32
    %c0_i32 = arith.constant 0 : i32
    %c0_i32_0 = arith.constant 0 : i32
    return %c0_i32, %1 : i32, i32
  }
  func.func @transform_2(%arg0: i32, %arg1: i32) -> (i32, i32) {
    %c1_i32 = arith.constant 1 : i32
    %0 = arith.muli %arg0, %c1_i32 : i32
    %1 = arith.addi %0, %arg1 : i32
    %c0_i32 = arith.constant 0 : i32
    %c0_i32_0 = arith.constant 0 : i32
    return %c0_i32, %1 : i32, i32
  }
  func.func @transform_3(%arg0: i32, %arg1: i32) -> (i32, i32) {
    %c1_i32 = arith.constant 1 : i32
    %0 = arith.muli %arg0, %c1_i32 : i32
    %1 = arith.addi %0, %arg1 : i32
    %c0_i32 = arith.constant 0 : i32
    %c0_i32_0 = arith.constant 0 : i32
    return %c0_i32, %1 : i32, i32
  }
  func.func @transform_4(%arg0: i32, %arg1: i32) -> (i32, i32, i32) {
    %c0_i32 = arith.constant 0 : i32
    %c0_i32_0 = arith.constant 0 : i32
    %c0_i32_1 = arith.constant 0 : i32
    return %arg0, %c0_i32, %c0_i32_0 : i32, i32, i32
  }
}

</mosaic_0001>

<bundles_post_ra>
// kernel: bce_logit_loss.1
= control target key start
LH: loop header
LB: loop body
LE: loop exit
PB: predicated region body
PF: predicated region fallthrough
CT: control target
= control target key end

     0   :  { %v93_v0 = vlaneseq  ;;  %vm86_vm0 = vcmask 17408   ;;  %v206_v3 = vmov 0.0   ;;  %vm130_vm4 = vcmask 58368   ;;  %s268_s0 = inlined_call_operand.vmem [shape: s32[1,8], index: 0, kind: input, shape index: {}]   ;;  %s269_s1 = inlined_call_operand.vmem [shape: f32[2,8], index: 1, kind: input, shape index: {}]   ;;  %s270_s2 = inlined_call_operand.vmem [shape: f32[2,8], index: 2, kind: input, shape index: {}]   ;;  %s271_s4 = inlined_call_operand.vmem [shape: f32[1,2,3], index: 4, kind: output, shape index: {}]   ;;  %s272_s3 = inlined_call_operand.vmem [shape: s32[2,8], index: 3, kind: input, shape index: {}]  }
   0x1   :  { %v196_v1 = vld [vmem:[%s268_s0] ss:$0 sm:$0xff]  ;;  %87 = vst.msk [vmem:[%s271_s4] sm:$0x3] %vm86_vm0, %v206_v3  ;;  %vm164_vm7 = vcmask 7168   ;;  %vm166_vm8 = vcmask 15360  }
   0x2   :  { %v89_v2 = vld [vmem:[%s269_s1] sm:$0x3]  ;;  %v94_v4 = vshrl.u32 %v93_v0, 7  ;;  %v96_v5 = vand.u32 127, %v93_v0 }
   0x3   :  { %v90_v6 = vld [vmem:[%s270_s2] sm:$0x3]  ;;  %v115_v7 = vand.u32 2147483647, %v89_v2  ;;  %v108_v29 = vmax.f32 %v89_v2, 0.0 }
   0x4   :  { %v141_v8 = vand.u32 2147483647, %v90_v6  ;;  %vm105_vm1 = vcmp.eq.s32.totalorder %v196_v1, %v94_v4  ;;  %vm106_vm2 = vcmp.lt.s32.totalorder %v96_v5, 8  ;;  %v91_v18 = vld [vmem:[%s272_s3] sm:$0x3]  ;;  %v111_v22 = vsub.s32 0, %v94_v4 }
   0x5   :  { %vm245_vm3 = vmand %vm105_vm1, %vm106_vm2  ;;  %v116_v10 = vsub.f32 0.0, %v115_v7  ;;  %v92_v21 = vcvt.s32.f32 %v91_v18  ;;  %v137_v23 = vsub.s32 1, %v94_v4  ;;  %v134_v33 = vmax.f32 %v90_v6, 0.0 }
   0x6   :  { %v142_v11 = vsub.f32 0.0, %v141_v8  ;;  %v159_v12 = vsel %vm245_vm3, 1.0, %v206_v3 }
   0x7   :  { %v117_v13 = vmul.f32 1.442695, %v116_v10  ;;  %v160_v15 = vsel %vm130_vm4, %v159_v12, 0.0  ;;  %v112_v25 = vrot.slane %v92_v21, %v111_v22  ;;  %v138_v27 = vrot.slane %v92_v21, %v137_v23 }
   0x8   :  { %v143_v14 = vmul.f32 1.442695, %v142_v11  ;;  %161 = vadd.xlane.f32.xlu1 %v160_v15  ;;  %v163_v55 = vld [vmem:[%s271_s4] sm:$0x3] }
   0x9   :  { %198 = vpow2.f32 %v117_v13  ;;  %v113_v30 = vmul.f32 %v112_v25, %v89_v2  ;;  %v139_v34 = vmul.f32 %v138_v27, %v90_v6 }
   0xa   :  { %200 = vpow2.f32 %v143_v14 }
   0xb   :  { %v114_v38 = vsub.f32 %v108_v29, %v113_v30  ;;  %v140_v42 = vsub.f32 %v134_v33, %v139_v34 }
  0x16   :  { %v199_v16 = vpop.eup %198 }
  0x17   :  { %v201_v17 = vpop.eup %200  ;;  %v119_v19 = vadd.f32 1.0, %v199_v16  ;;  %v122_v24 = vmul.f32 -0.5, %v199_v16  ;;  %v125_v31 = vand.u32 2147483647, %v199_v16 }
  0x18   :  { %v145_v20 = vadd.f32 1.0, %v201_v17  ;;  %v148_v26 = vmul.f32 -0.5, %v201_v17  ;;  %v151_v35 = vand.u32 2147483647, %v201_v17 }
  0x19   :  { %202 = vlog2.f32 %v119_v19  ;;  %v123_v28 = vadd.f32 1.0, %v122_v24  ;;  %vm126_vm5 = vcmp.lt.f32.partialorder %v125_v31, 0.0004427343 }
  0x1a   :  { %204 = vlog2.f32 %v145_v20  ;;  %v149_v32 = vadd.f32 1.0, %v148_v26  ;;  %vm152_vm6 = vcmp.lt.f32.partialorder %v151_v35, 0.0004427343 }
  0x1b   :  { %v124_v36 = vmul.f32 %v199_v16, %v123_v28 }
  0x1c   :  { %v150_v39 = vmul.f32 %v201_v17, %v149_v32 }
  0x26   :  { %v203_v37 = vpop.eup %202 }
  0x27   :  { %v205_v40 = vpop.eup %204  ;;  %v121_v41 = vmul.f32 0.6931472, %v203_v37 }
  0x28   :  { %v147_v43 = vmul.f32 0.6931472, %v205_v40 }
  0x29   :  { %v127_v44 = vsel %vm126_vm5, %v124_v36, %v121_v41 }
  0x2a   :  { %v128_v45 = vadd.f32 %v127_v44, %v114_v38  ;;  %v153_v46 = vsel %vm152_vm6, %v150_v39, %v147_v43 }
  0x2b   :  { %v154_v47 = vadd.f32 %v153_v46, %v140_v42 }
  0x2c   :  { %v129_v48 = vsel %vm245_vm3, %v128_v45, 0.0 }
  0x2d   :  { %v131_v49 = vsel %vm130_vm4, %v129_v48, 0.0  ;;  %v155_v50 = vsel %vm245_vm3, %v154_v47, 0.0 }
  0x2e   :  { %132 = vadd.xlane.f32.xlu0 %v131_v49  ;;  %v156_v51 = vsel %vm130_vm4, %v155_v50, 0.0 }
  0x32   :  { %157 = vadd.xlane.f32.xlu0 %v156_v51 }
  0x91   :  { %v162_v53 = vpop.xlane.xlu1 %161 }
  0xb7   :  { %v133_v52 = vpop.xlane.xlu0 %132 }
  0xbb   :  { %v158_v54 = vpop.xlane.xlu0 %157 }
  0xbc   :  { %v165_v56 = vsel %vm164_vm7, %v133_v52, %v158_v54 }
  0xbd   :  { %v167_v57 = vsel %vm166_vm8, %v165_v56, %v162_v53 }
  0xbe   :  { %v168_v58 = vadd.f32 %v167_v57, %v163_v55 }
  0xc0   :  { %170 = vst.msk [vmem:[%s271_s4] sm:$0x3] %vm86_vm0, %v168_v58 }

</bundles_post_ra>
